<compile_context>
chip_gen: v7x
topology: tpu7x:2x2x1
jax: 0.10.0
libtpu: 0.0.40
codegen_flags: <defaults>
</compile_context>

<pallas_src>
import math

import jax
import jax.numpy as jnp
from jax.experimental import pallas as pl
from jax.experimental.pallas import tpu as pltpu

_LANE = 128
_MAX_C = 8192                      # cap lane width (8192 * 4B = 32 KiB / row)
_TILE_BYTES = 4 * 1024 * 1024      # per-tile target; 4 live tiles ~ 16 MiB VMEM
_VMEM_LIMIT = 32 * 1024 * 1024     # explicit scoped-VMEM budget, safe on v5e/v6e/v7x


def _copy_kernel(x_ref, o_ref):
    # Pure pass-through of the current VMEM tile.
    o_ref[...] = x_ref[...]


def _sublane_multiple(dtype) -> int:
    # Packed-sublane multiple: 8 for 32-bit, 16 for 16-bit, 32 for 8-bit dtypes.
    return {4: 8, 2: 16, 1: 32}.get(jnp.dtype(dtype).itemsize, 8)


def _pick_lane_width(n: int) -> int:
    # Largest multiple of 128 (<= _MAX_C) that exactly divides n; 0 if none.
    for c in range(_MAX_C, _LANE - 1, -_LANE):
        if n % c == 0:
            return c
    return 0


def encoder_model_forward(x: jax.Array) -> jax.Array:
    """EncoderModel.forward: identity pass-through (module defines no compute)."""
    orig_shape = x.shape
    n = math.prod(orig_shape)
    itemsize = jnp.dtype(x.dtype).itemsize
    sub = _sublane_multiple(x.dtype)

    # Flatten to 1-D: layout-preserving metadata op, no HBM traffic.
    flat = x.reshape(-1)

    c = _pick_lane_width(n)
    pad_tail = 0
    if c == 0:
        # Rare fallback (element count has no multiple-of-128 divisor): pad the
        # flat tail up to a (sublane*128)-multiple. Costs one extra HBM pass;
        # never hit by common power-of-two tensor shapes.
        chunk = sub * _LANE
        pad_tail = (-n) % chunk
        flat = jnp.pad(flat, (0, pad_tail))
        c = _pick_lane_width(n + pad_tail)

    total = n + pad_tail
    r = total // c
    x2d = flat.reshape(r, c)

    # Row tile sized by VMEM budget. Double-buffered input + output blocks
    # => 4 live tiles; keep each tile <= ~4 MiB so the footprint stays well
    # under the scoped limit on every generation (incl. v7x's 64 MiB VMEM).
    max_tile_r = max(_TILE_BYTES // (c * itemsize), 1)
    if max_tile_r >= r:
        tile_r = r  # single block == full row extent (always a legal block)
    else:
        # Multiple of the packed sublane count; ragged last block (if any) is
        # masked by Pallas, so tile_r need not divide r.
        tile_r = max((max_tile_r // sub) * sub, sub)
    grid_r = pl.cdiv(r, tile_r)

    out2d = pl.pallas_call(
        _copy_kernel,
        out_shape=jax.ShapeDtypeStruct((r, c), x.dtype),
        grid_spec=pltpu.PrefetchScalarGridSpec(
            num_scalar_prefetch=0,
            grid=(grid_r,),
            in_specs=[pl.BlockSpec((tile_r, c), lambda i: (i, 0))],
            out_specs=pl.BlockSpec((tile_r, c), lambda i: (i, 0)),
        ),
        compiler_params=pltpu.CompilerParams(
            dimension_semantics=("parallel",),   # shards grid across v7x's 2 TCs
            vmem_limit_bytes=_VMEM_LIMIT,
        ),
    )(x2d)

    out_flat = out2d.reshape(-1)
    if pad_tail:
        out_flat = out_flat[:n]
    return out_flat.reshape(orig_shape)


if __name__ == "__main__":
    key = jax.random.PRNGKey(0)
    # Small NCHW input: batch=2, channels=4, spatial=16x16.
    x = jax.random.normal(key, (2, 4, 16, 16), dtype=jnp.float32)

    y = encoder_model_forward(x)
    y = jax.block_until_ready(y)

    # Correctness check against the (trivial) reference semantics: identity.
    assert y.shape == x.shape and y.dtype == x.dtype
    assert bool(jnp.allclose(y, x))

    print("KERNEL_OK")
</pallas_src>

<mosaic_0001>
module attributes {stable_mosaic.version = 11 : i64} {
  func.func @_copy_kernel(%arg0: i32, %arg1: memref<1x2048xf32, #tpu.memory_space<vmem>>, %arg2: memref<1x2048xf32, #tpu.memory_space<vmem>>) attributes {dimension_semantics = [#tpu.dimension_semantics<parallel>], iteration_bounds = array<i64: 1>, scalar_prefetch = 0 : i64, scratch_operands = 0 : i64, tpu.core_type = #tpu.core_type<tc>, window_params = [{transform_indices = @transform_0, window_bounds = array<i64: 1, 2048>}, {transform_indices = @transform_1, window_bounds = array<i64: 1, 2048>}]} {
    %c0 = arith.constant 0 : index
    %c0_0 = arith.constant 0 : index
    %0 = vector.load %arg1[%c0, %c0_0] : memref<1x2048xf32, #tpu.memory_space<vmem>>, vector<1x2048xf32>
    %c0_1 = arith.constant 0 : index
    %c0_2 = arith.constant 0 : index
    %1 = vector.load %arg2[%c0_1, %c0_2] : memref<1x2048xf32, #tpu.memory_space<vmem>>, vector<1x2048xf32>
    tpu.vector_store %arg2[%c0_1, %c0_2], %0 {strides = array<i32>} : memref<1x2048xf32, #tpu.memory_space<vmem>>, vector<1x2048xf32>,
    return
  }
  func.func @transform_0(%arg0: i32) -> (i32, i32) {
    %c0_i32 = arith.constant 0 : i32
    %c0_i32_0 = arith.constant 0 : i32
    return %arg0, %c0_i32 : i32, i32
  }
  func.func @transform_1(%arg0: i32) -> (i32, i32) {
    %c0_i32 = arith.constant 0 : i32
    %c0_i32_0 = arith.constant 0 : i32
    return %arg0, %c0_i32 : i32, i32
  }
}

</mosaic_0001>

<bundles_post_ra>
// kernel: tpu_custom_call.1
= control target key start
LH: loop header
LB: loop body
LE: loop exit
PB: predicated region body
PF: predicated region fallthrough
CT: control target
= control target key end

     0   :  { %6 = vsyncpa [#allocation3], 0  ;;  %s126_s0 = inlined_call_operand.hbm [shape: f32[1,2048], index: 0, kind: input, shape index: {}]   ;;  %s127_s1 = inlined_call_operand.hbm [shape: f32[1,2048], index: 1, kind: output, shape index: {}]  }
   0x1   :  { %7 = vsyncpa [#allocation4], 0  ;;  %s90_s6 = smov [#allocation2]   ;;  %s42_s10 = scalar_lea.hbm %s126_s0, 256 }
   0x2   :  { %s14_s7 = sshll.u32 %s90_s6, 4  ;;  %p43_p0 = scmp.ne.s32.totalorder %s126_s0, %s42_s10  ;;  %s15_s7 = int_to_ptr.vmem [resolvable:$true] %s14_s7 }
   0x3   :  { %p46_p1 = scmp.lt.u32.totalorder %s42_s10, %s126_s0 }
   0x5   :  { %p48_p2 = pnand %p46_p1, %p43_p0 }
   0x7   :  { %51 = shalt.err (!%p48_p2)
}
   0x8   :  { %s52_s15 = scalar_lea.vmem %s15_s7, 256  ;;  %p57_p4 = scmp.lt.s32.totalorder %s15_s7, %s15_s7 }
   0x9   :  { %p53_p3 = scmp.ne.s32.totalorder %s15_s7, %s52_s15  ;;  %p58_p5 = scmp.lt.s32.totalorder %s52_s15, %s52_s15 }
   0xb   :  { %p59_p6 = por %p58_p5, %p57_p4 }
   0xd   :  { %p60_p7 = pnand %p59_p6, %p53_p3 }
   0xf   :  { %63 = shalt.err (!%p60_p7)
}
  0x10   :  { %17 = dma.hbm_to_vmem [thread:$0]  %s126_s0, 256, %s15_s7, [#allocation3]  }
  0x11   :  { %86 = dma.done.wait [#allocation3], 256  }
  0x12   :  { %87 = vsyncadd [#allocation3], 4294967040  ;;  %s91_s18 = smov [#allocation5]   ;;  %v21_v0 = vld [vmem:[#allocation2] sm:$0xff]  ;;  %v22_v1 = vld [vmem:[#allocation2 + $0x8] sm:$0xff] }
  0x13   :  { %s31_s19 = sshll.u32 %s91_s18, 4  ;;  %23 = vst [vmem:[#allocation5] sm:$0xff] %v21_v0  ;;  %24 = vst [vmem:[#allocation5 + $0x8] sm:$0xff] %v22_v1  ;;  %s32_s19 = int_to_ptr.vmem [resolvable:$true] %s31_s19 }
  0x14   :  { %s64_s20 = scalar_lea.vmem %s32_s19, 256  ;;  %p69_p9 = scmp.lt.s32.totalorder %s32_s19, %s32_s19 }
  0x15   :  { %p65_p8 = scmp.ne.s32.totalorder %s32_s19, %s64_s20  ;;  %p70_p10 = scmp.lt.s32.totalorder %s64_s20, %s64_s20 }
  0x17   :  { %p71_p11 = por %p70_p10, %p69_p9 }
  0x19   :  { %p72_p12 = pnand %p71_p11, %p65_p8 }
  0x1b   :  { %75 = shalt.err (!%p72_p12)
}
  0x1c   :  { %s76_s0 = scalar_lea.hbm %s127_s1, 256 }
  0x1d   :  { %p77_p13 = scmp.ne.s32.totalorder %s127_s1, %s76_s0  ;;  %p80_p0 = scmp.lt.u32.totalorder %s76_s0, %s127_s1 }
  0x1f   :  { %p82_p1 = pnand %p80_p0, %p77_p13 }
  0x21   :  { %85 = shalt.err (!%p82_p1)
}
  0x22   :  { %34 = dma.vmem_to_hbm [thread:$0]  %s32_s19, 256, %s127_s1, [#allocation4]  }
  0x23   :  { %88 = dma.done.wait [#allocation4], 256  }
  0x24   :  { %89 = vsyncadd [#allocation4], 4294967040 }
  0x25   :  { %38 = vsyncpa [#allocation3], 1 }
  0x26   :  { %39 = vsyncpa [#allocation4], 1 }

</bundles_post_ra>
